<compile_context>
chip_gen: v6e
topology: v6e:2x2x1
jax: 0.10.0
libtpu: 0.0.40
codegen_flags: <defaults>
</compile_context>

<pallas_src>
import functools

import jax
import jax.numpy as jnp
from jax.experimental import pallas as pl
from jax.experimental.pallas import tpu as pltpu


def _round_up(x, m):
    return (x + m - 1) // m * m


def _im2col_nchw(x_nchw, k=3, stride=2, pad=1):
    """(N,C,H,W) -> patches (N*Ho*Wo, k*k*C) in (kh, kw, c) column order."""
    N, C, H, W = x_nchw.shape
    x = jnp.transpose(x_nchw, (0, 2, 3, 1))                      # NHWC
    xp = jnp.pad(x, ((0, 0), (pad, pad), (pad, pad), (0, 0)))
    Ho = (H + 2 * pad - k) // stride + 1
    Wo = (W + 2 * pad - k) // stride + 1
    cols = []
    for kh in range(k):
        for kw in range(k):
            cols.append(xp[:, kh:kh + stride * Ho:stride,
                           kw:kw + stride * Wo:stride, :])
    patches = jnp.stack(cols, axis=-2)                           # (N,Ho,Wo,9,C)
    return patches.reshape(N * Ho * Wo, k * k * C), (N, Ho, Wo)


def _stats_kernel(p_ref, w_ref, sum_ref, sq_ref):
    """Pass 1: accumulate per-channel sum and sum-of-squares of conv output."""
    @pl.when(pl.program_id(0) == 0)
    def _():
        sum_ref[...] = jnp.zeros_like(sum_ref)
        sq_ref[...] = jnp.zeros_like(sq_ref)

    y = jnp.dot(p_ref[...], w_ref[...], preferred_element_type=jnp.float32)
    sum_ref[...] += jnp.sum(y, axis=0, keepdims=True)
    sq_ref[...] += jnp.sum(y * y, axis=0, keepdims=True)


def _apply_kernel(p_ref, w_ref, scale_ref, shift_ref, o_ref, *, neg_slope):
    """Pass 2: conv tile -> folded BN affine (one FMA) -> LeakyReLU."""
    y = jnp.dot(p_ref[...], w_ref[...], preferred_element_type=jnp.float32)
    z = y * scale_ref[...] + shift_ref[...]
    o_ref[...] = jnp.where(z >= 0, z, neg_slope * z)


def downsample_forward(x_nchw, conv_w, conv_b, bn_gamma, bn_beta, *,
                       eps=1e-5, neg_slope=0.01, tile_m=512,
                       compute_dtype=jnp.bfloat16):
    """x: (N,Cin,H,W), conv_w: (Cout,Cin,3,3). Returns (N,Cout,Ho,Wo) f32."""
    # Conv bias cancels exactly under training-mode BatchNorm (the batch mean
    # absorbs any per-channel constant), so the kernels never touch it.
    del conv_b

    _, c_in, _, _ = x_nchw.shape
    c_out = conv_w.shape[0]
    K = 9 * c_in

    patches, (N, Ho, Wo) = _im2col_nchw(x_nchw.astype(compute_dtype))
    M = N * Ho * Wo

    tm = min(tile_m, _round_up(M, 8))
    m_pad = _round_up(M, tm)
    if m_pad != M:                  # zero rows contribute nothing to the stats
        patches = jnp.pad(patches, ((0, m_pad - M), (0, 0)))
    n_tiles = m_pad // tm

    c_pad = _round_up(c_out, 128)   # lane-dense output stores
    w2d = jnp.transpose(conv_w, (2, 3, 1, 0)).reshape(K, c_out)
    w2d = jnp.pad(w2d.astype(compute_dtype), ((0, 0), (0, c_pad - c_out)))

    # ---- pass 1: per-channel sum / sum-of-squares over all M rows ----------
    sum_y, sum_yy = pl.pallas_call(
        _stats_kernel,
        grid=(n_tiles,),
        in_specs=[pl.BlockSpec((tm, K), lambda m: (m, 0)),
                  pl.BlockSpec((K, c_pad), lambda m: (0, 0))],
        out_specs=[pl.BlockSpec((1, c_pad), lambda m: (0, 0)),
                   pl.BlockSpec((1, c_pad), lambda m: (0, 0))],
        out_shape=[jax.ShapeDtypeStruct((1, c_pad), jnp.float32),
                   jax.ShapeDtypeStruct((1, c_pad), jnp.float32)],
        compiler_params=pltpu.CompilerParams(
            dimension_semantics=("arbitrary",)),
    )(patches, w2d)

    # ---- fold BN into one per-channel scale/shift (tiny (1,C) math) --------
    mean = sum_y / M
    var = jnp.maximum(sum_yy / M - mean * mean, 0.0)    # biased, PyTorch BN
    gamma = jnp.pad(bn_gamma.astype(jnp.float32), (0, c_pad - c_out),
                    constant_values=1.0).reshape(1, c_pad)
    beta = jnp.pad(bn_beta.astype(jnp.float32),
                   (0, c_pad - c_out)).reshape(1, c_pad)
    scale = gamma * jax.lax.rsqrt(var + eps)
    shift = beta - mean * scale

    # ---- pass 2: recompute conv tile, apply affine + LeakyReLU -------------
    out2d = pl.pallas_call(
        functools.partial(_apply_kernel, neg_slope=neg_slope),
        grid=(n_tiles,),
        in_specs=[pl.BlockSpec((tm, K), lambda m: (m, 0)),
                  pl.BlockSpec((K, c_pad), lambda m: (0, 0)),
                  pl.BlockSpec((1, c_pad), lambda m: (0, 0)),
                  pl.BlockSpec((1, c_pad), lambda m: (0, 0))],
        out_specs=pl.BlockSpec((tm, c_pad), lambda m: (m, 0)),
        out_shape=jax.ShapeDtypeStruct((m_pad, c_pad), jnp.float32),
        compiler_params=pltpu.CompilerParams(
            dimension_semantics=("parallel",)),
    )(patches, w2d, scale, shift)

    out = out2d[:M, :c_out].reshape(N, Ho, Wo, c_out)
    return jnp.transpose(out, (0, 3, 1, 2))             # back to NCHW


def _reference(x, w, b, gamma, beta, eps=1e-5, neg_slope=0.01):
    y = jax.lax.conv_general_dilated(
        x.astype(jnp.float32), w.astype(jnp.float32),
        window_strides=(2, 2), padding=((1, 1), (1, 1)),
        dimension_numbers=("NCHW", "OIHW", "NCHW"),
    ) + b[None, :, None, None]
    mean = jnp.mean(y, axis=(0, 2, 3), keepdims=True)
    var = jnp.mean((y - mean) ** 2, axis=(0, 2, 3), keepdims=True)
    z = (y - mean) * jax.lax.rsqrt(var + eps)
    z = z * gamma[None, :, None, None] + beta[None, :, None, None]
    return jnp.where(z >= 0, z, neg_slope * z)


if __name__ == "__main__":
    # Small shapes consistent with DownSample(in_channel=4, out_channel=8).
    N, C_IN, C_OUT, H, W = 2, 4, 8, 16, 16

    key = jax.random.PRNGKey(0)
    kx, kw, kb, kg, kbt = jax.random.split(key, 5)
    x = jax.random.normal(kx, (N, C_IN, H, W), dtype=jnp.float32)
    conv_w = jax.random.normal(kw, (C_OUT, C_IN, 3, 3), dtype=jnp.float32) * 0.1
    conv_b = jax.random.normal(kb, (C_OUT,), dtype=jnp.float32) * 0.1
    bn_gamma = 1.0 + 0.1 * jax.random.normal(kg, (C_OUT,), dtype=jnp.float32)
    bn_beta = 0.1 * jax.random.normal(kbt, (C_OUT,), dtype=jnp.float32)

    fwd = jax.jit(downsample_forward)
    out = jax.block_until_ready(fwd(x, conv_w, conv_b, bn_gamma, bn_beta))
    assert out.shape == (N, C_OUT, H // 2, W // 2), out.shape

    # Apples-to-apples check: reference sees the same bf16-rounded conv
    # operands, all other math in f32 (the kernel's accumulation is f32).
    xq = x.astype(jnp.bfloat16).astype(jnp.float32)
    wq = conv_w.astype(jnp.bfloat16).astype(jnp.float32)
    ref = _reference(xq, wq, conv_b, bn_gamma, bn_beta)
    assert jnp.allclose(out, ref, atol=2e-3, rtol=2e-3), float(
        jnp.max(jnp.abs(out - ref)))

    # Loose check against the pure-f32 module (bf16 conv-input rounding only).
    ref_f32 = _reference(x, conv_w, conv_b, bn_gamma, bn_beta)
    assert jnp.allclose(out, ref_f32, atol=1e-1, rtol=1e-1), float(
        jnp.max(jnp.abs(out - ref_f32)))

    print("KERNEL_OK")
</pallas_src>

<mosaic_0001>
module attributes {stable_mosaic.version = 11 : i64} {
  func.func @_stats_kernel(%arg0: i32, %arg1: memref<128x36xbf16, #tpu.memory_space<vmem>>, %arg2: memref<36x128xbf16, #tpu.memory_space<vmem>>, %arg3: memref<1x128xf32, #tpu.memory_space<vmem>>, %arg4: memref<1x128xf32, #tpu.memory_space<vmem>>) attributes {dimension_semantics = [#tpu.dimension_semantics<arbitrary>], iteration_bounds = array<i64: 1>, scalar_prefetch = 0 : i64, scratch_operands = 0 : i64, tpu.core_type = #tpu.core_type<tc>, window_params = [{transform_indices = @transform_0, window_bounds = array<i64: 128, 36>}, {pipeline_mode = #tpu.pipeline_mode<synchronous>, transform_indices = @transform_1, window_bounds = array<i64: 36, 128>}, {pipeline_mode = #tpu.pipeline_mode<synchronous>, transform_indices = @transform_2, window_bounds = array<i64: 1, 128>}, {pipeline_mode = #tpu.pipeline_mode<synchronous>, transform_indices = @transform_3, window_bounds = array<i64: 1, 128>}]} {
    %c0_i32 = arith.constant 0 : i32
    %0 = arith.cmpi eq, %arg0, %c0_i32 : i32
    %1 = arith.extui %0 : i1 to i32
    %c0_i32_0 = arith.constant 0 : i32
    %2 = arith.cmpi ne, %1, %c0_i32_0 : i32
    scf.if %2 {
      %cst_14 = arith.constant 0.000000e+00 : f32
      %17 = vector.broadcast %cst_14 : f32 to vector<1x128xf32>
      %c0_15 = arith.constant 0 : index
      %c0_16 = arith.constant 0 : index
      %18 = vector.load %arg3[%c0_15, %c0_16] : memref<1x128xf32, #tpu.memory_space<vmem>>, vector<1x128xf32>
      tpu.vector_store %arg3[%c0_15, %c0_16], %17 {strides = array<i32>} : memref<1x128xf32, #tpu.memory_space<vmem>>, vector<1x128xf32>,
      %cst_17 = arith.constant 0.000000e+00 : f32
      %19 = vector.broadcast %cst_17 : f32 to vector<1x128xf32>
      %c0_18 = arith.constant 0 : index
      %c0_19 = arith.constant 0 : index
      %20 = vector.load %arg4[%c0_18, %c0_19] : memref<1x128xf32, #tpu.memory_space<vmem>>, vector<1x128xf32>
      tpu.vector_store %arg4[%c0_18, %c0_19], %19 {strides = array<i32>} : memref<1x128xf32, #tpu.memory_space<vmem>>, vector<1x128xf32>,
    } else {
    }
    %c0 = arith.constant 0 : index
    %c0_1 = arith.constant 0 : index
    %3 = vector.load %arg1[%c0, %c0_1] : memref<128x36xbf16, #tpu.memory_space<vmem>>, vector<128x36xbf16>
    %c0_2 = arith.constant 0 : index
    %c0_3 = arith.constant 0 : index
    %4 = vector.load %arg2[%c0_2, %c0_3] : memref<36x128xbf16, #tpu.memory_space<vmem>>, vector<36x128xbf16>
    %cst = arith.constant dense<0.000000e+00> : vector<128x128xf32>
    %5 = tpu.matmul %3, %4, %cst {dimension_numbers = #tpu.dot_dimension_numbers<[1], [0], [0], [1], [0, 0, 1, 1], [], []>} : vector<128x36xbf16>, vector<36x128xbf16>, vector<128x128xf32> -> vector<128x128xf32>
    %c0_4 = arith.constant 0 : index
    %c0_5 = arith.constant 0 : index
    %6 = vector.load %arg3[%c0_4, %c0_5] : memref<1x128xf32, #tpu.memory_space<vmem>>, vector<1x128xf32>
    %cst_6 = arith.constant dense<0.000000e+00> : vector<128xf32>
    %7 = vector.multi_reduction <add>, %5, %cst_6 [0] : vector<128x128xf32> to vector<128xf32>
    %8 = vector.shape_cast %7 : vector<128xf32> to vector<1x128xf32>
    %9 = arith.addf %6, %8 : vector<1x128xf32>
    %c0_7 = arith.constant 0 : index
    %c0_8 = arith.constant 0 : index
    %10 = vector.load %arg3[%c0_7, %c0_8] : memref<1x128xf32, #tpu.memory_space<vmem>>, vector<1x128xf32>
    tpu.vector_store %arg3[%c0_7, %c0_8], %9 {strides = array<i32>} : memref<1x128xf32, #tpu.memory_space<vmem>>, vector<1x128xf32>,
    %c0_9 = arith.constant 0 : index
    %c0_10 = arith.constant 0 : index
    %11 = vector.load %arg4[%c0_9, %c0_10] : memref<1x128xf32, #tpu.memory_space<vmem>>, vector<1x128xf32>
    %12 = arith.mulf %5, %5 : vector<128x128xf32>
    %cst_11 = arith.constant dense<0.000000e+00> : vector<128xf32>
    %13 = vector.multi_reduction <add>, %12, %cst_11 [0] : vector<128x128xf32> to vector<128xf32>
    %14 = vector.shape_cast %13 : vector<128xf32> to vector<1x128xf32>
    %15 = arith.addf %11, %14 : vector<1x128xf32>
    %c0_12 = arith.constant 0 : index
    %c0_13 = arith.constant 0 : index
    %16 = vector.load %arg4[%c0_12, %c0_13] : memref<1x128xf32, #tpu.memory_space<vmem>>, vector<1x128xf32>
    tpu.vector_store %arg4[%c0_12, %c0_13], %15 {strides = array<i32>} : memref<1x128xf32, #tpu.memory_space<vmem>>, vector<1x128xf32>,
    return
  }
  func.func @transform_0(%arg0: i32) -> (i32, i32) {
    %c0_i32 = arith.constant 0 : i32
    %c0_i32_0 = arith.constant 0 : i32
    return %arg0, %c0_i32 : i32, i32
  }
  func.func @transform_1(%arg0: i32) -> (i32, i32) {
    %c0_i32 = arith.constant 0 : i32
    %c0_i32_0 = arith.constant 0 : i32
    %c0_i32_1 = arith.constant 0 : i32
    return %c0_i32, %c0_i32_0 : i32, i32
  }
  func.func @transform_2(%arg0: i32) -> (i32, i32) {
    %c0_i32 = arith.constant 0 : i32
    %c0_i32_0 = arith.constant 0 : i32
    %c0_i32_1 = arith.constant 0 : i32
    return %c0_i32, %c0_i32_0 : i32, i32
  }
  func.func @transform_3(%arg0: i32) -> (i32, i32) {
    %c0_i32 = arith.constant 0 : i32
    %c0_i32_0 = arith.constant 0 : i32
    %c0_i32_1 = arith.constant 0 : i32
    return %c0_i32, %c0_i32_0 : i32, i32
  }
}

module attributes {stable_mosaic.version = 11 : i64} {
  func.func @_apply_kernel(%arg0: i32, %arg1: memref<128x36xbf16, #tpu.memory_space<vmem>>, %arg2: memref<36x128xbf16, #tpu.memory_space<vmem>>, %arg3: memref<1x128xf32, #tpu.memory_space<vmem>>, %arg4: memref<1x128xf32, #tpu.memory_space<vmem>>, %arg5: memref<128x128xf32, #tpu.memory_space<vmem>>) attributes {dimension_semantics = [#tpu.dimension_semantics<parallel>], iteration_bounds = array<i64: 1>, scalar_prefetch = 0 : i64, scratch_operands = 0 : i64, tpu.core_type = #tpu.core_type<tc>, window_params = [{transform_indices = @transform_0, window_bounds = array<i64: 128, 36>}, {pipeline_mode = #tpu.pipeline_mode<synchronous>, transform_indices = @transform_1, window_bounds = array<i64: 36, 128>}, {pipeline_mode = #tpu.pipeline_mode<synchronous>, transform_indices = @transform_2, window_bounds = array<i64: 1, 128>}, {pipeline_mode = #tpu.pipeline_mode<synchronous>, transform_indices = @transform_3, window_bounds = array<i64: 1, 128>}, {transform_indices = @transform_4, window_bounds = array<i64: 128, 128>}]} {
    %c0 = arith.constant 0 : index
    %c0_0 = arith.constant 0 : index
    %0 = vector.load %arg1[%c0, %c0_0] : memref<128x36xbf16, #tpu.memory_space<vmem>>, vector<128x36xbf16>
    %c0_1 = arith.constant 0 : index
    %c0_2 = arith.constant 0 : index
    %1 = vector.load %arg2[%c0_1, %c0_2] : memref<36x128xbf16, #tpu.memory_space<vmem>>, vector<36x128xbf16>
    %cst = arith.constant dense<0.000000e+00> : vector<128x128xf32>
    %2 = tpu.matmul %0, %1, %cst {dimension_numbers = #tpu.dot_dimension_numbers<[1], [0], [0], [1], [0, 0, 1, 1], [], []>} : vector<128x36xbf16>, vector<36x128xbf16>, vector<128x128xf32> -> vector<128x128xf32>
    %c0_3 = arith.constant 0 : index
    %c0_4 = arith.constant 0 : index
    %3 = vector.load %arg3[%c0_3, %c0_4] : memref<1x128xf32, #tpu.memory_space<vmem>>, vector<1x128xf32>
    %4 = vector.broadcast %3 : vector<1x128xf32> to vector<128x128xf32>
    %5 = arith.mulf %2, %4 : vector<128x128xf32>
    %c0_5 = arith.constant 0 : index
    %c0_6 = arith.constant 0 : index
    %6 = vector.load %arg4[%c0_5, %c0_6] : memref<1x128xf32, #tpu.memory_space<vmem>>, vector<1x128xf32>
    %7 = vector.broadcast %6 : vector<1x128xf32> to vector<128x128xf32>
    %8 = arith.addf %5, %7 : vector<128x128xf32>
    %cst_7 = arith.constant 0.000000e+00 : f32
    %9 = vector.broadcast %cst_7 : f32 to vector<128x128xf32>
    %10 = arith.cmpf oge, %8, %9 : vector<128x128xf32>
    %cst_8 = arith.constant 0.00999999977 : f32
    %11 = vector.broadcast %cst_8 : f32 to vector<128x128xf32>
    %12 = arith.mulf %11, %8 : vector<128x128xf32>
    %13 = arith.select %10, %8, %12 : vector<128x128xi1>, vector<128x128xf32>
    %c0_9 = arith.constant 0 : index
    %c0_10 = arith.constant 0 : index
    %14 = vector.load %arg5[%c0_9, %c0_10] : memref<128x128xf32, #tpu.memory_space<vmem>>, vector<128x128xf32>
    tpu.vector_store %arg5[%c0_9, %c0_10], %13 {strides = array<i32>} : memref<128x128xf32, #tpu.memory_space<vmem>>, vector<128x128xf32>,
    return
  }
  func.func @transform_0(%arg0: i32) -> (i32, i32) {
    %c0_i32 = arith.constant 0 : i32
    %c0_i32_0 = arith.constant 0 : i32
    return %arg0, %c0_i32 : i32, i32
  }
  func.func @transform_1(%arg0: i32) -> (i32, i32) {
    %c0_i32 = arith.constant 0 : i32
    %c0_i32_0 = arith.constant 0 : i32
    %c0_i32_1 = arith.constant 0 : i32
    return %c0_i32, %c0_i32_0 : i32, i32
  }
  func.func @transform_2(%arg0: i32) -> (i32, i32) {
    %c0_i32 = arith.constant 0 : i32
    %c0_i32_0 = arith.constant 0 : i32
    %c0_i32_1 = arith.constant 0 : i32
    return %c0_i32, %c0_i32_0 : i32, i32
  }
  func.func @transform_3(%arg0: i32) -> (i32, i32) {
    %c0_i32 = arith.constant 0 : i32
    %c0_i32_0 = arith.constant 0 : i32
    %c0_i32_1 = arith.constant 0 : i32
    return %c0_i32, %c0_i32_0 : i32, i32
  }
  func.func @transform_4(%arg0: i32) -> (i32, i32) {
    %c0_i32 = arith.constant 0 : i32
    %c0_i32_0 = arith.constant 0 : i32
    return %arg0, %c0_i32 : i32, i32
  }
}

</mosaic_0001>

<bundles_post_ra>
// kernel: downsample_forward.3
= control target key start
LH: loop header
LB: loop body
LE: loop exit
PB: predicated region body
PF: predicated region fallthrough
CT: control target
= control target key end

     0   :  { %vm119_vm0 = vcmask 1041408   ;;  %vm94_vm1 = vcmask 293888   ;;  %s563_s1 = inlined_call_operand.vmem [shape: bf16[36,128], index: 1, kind: input, shape index: {}]   ;;  %s564_s0 = inlined_call_operand.vmem [shape: bf16[128,36], index: 0, kind: input, shape index: {}]   ;;  %s565_s2 = inlined_call_operand.vmem [shape: f32[1,128], index: 2, kind: input, shape index: {}]   ;;  %s566_s3 = inlined_call_operand.vmem [shape: f32[1,128], index: 3, kind: input, shape index: {}]   ;;  %s567_s4 = inlined_call_operand.vmem [shape: f32[128,128], index: 4, kind: output, shape index: {}]  }
   0x1   :  { %v396_v0 = vld [vmem:[%s563_s1 + $0x10] ss:$0 sps:$4 sm:$0x33]   ;;  %v397_v1 = vld [vmem:[%s563_s1 + $0x8] sm:$0xff]   ;;  %v398_v3 = vld [vmem:[%s563_s1] sm:$0xff]  }
   0x2   :  { %394 = vmatprep.subr.msk.bf16.mxu0 %vm119_vm0, %v396_v0  ;;  %395 = vmatprep.subr.msk.bf16.mxu1 %vm119_vm0, %v396_v0  ;;  %v121_v2 = vsel %vm119_vm0, %v396_v0, 0  ;;  %v399_v4 = vld [vmem:[%s564_s0] sm:$0xff]   ;;  %v401_v6 = vld [vmem:[%s564_s0 + $0x8] sm:$0xff]   ;;  %v403_v8 = vld [vmem:[%s564_s0 + $0x10] sm:$0xff]  }
   0x3   :  { %367 = vmatpush3.bf16.msra.mxu0 %v121_v2  ;;  %391 = vmatpush3.bf16.msra.mxu1 %v121_v2  ;;  %v400_v5 = vld [vmem:[%s564_s0 + $0x20] sm:$0xff]   ;;  %v402_v7 = vld [vmem:[%s564_s0 + $0x28] sm:$0xff]   ;;  %v404_v9 = vld [vmem:[%s564_s0 + $0x30] sm:$0xff]  }
   0x4   :  { %368 = vmatprep.subr.bf16.mxu0 %v397_v1  ;;  %389 = vmatprep.subr.bf16.mxu1 %v397_v1  ;;  %v405_v10 = vld [vmem:[%s564_s0 + $0x18] sm:$0xff]   ;;  %v476_v12 = vld [vmem:[%s565_s2] ss:$0 sm:$0xff] }
   0x5   :  { %372 = vmatprep.mubr.msk.bf16.mxu0 %vm94_vm1, %v399_v4  ;;  %380 = vmatprep.mubr.msk.bf16.mxu1 %vm94_vm1, %v400_v5  ;;  %v406_v11 = vld [vmem:[%s564_s0 + $0x38] sm:$0xff]   ;;  %v481_v14 = vld [vmem:[%s566_s3] ss:$0 sm:$0xff] }
   0x7   :  { %369 = vmatpush3.bf16.msra.mxu0 %v397_v1  ;;  %392 = vmatpush3.bf16.msra.mxu1 %v397_v1 }
   0x8   :  { %370 = vmatprep.subr.bf16.mxu0 %v398_v3  ;;  %390 = vmatprep.subr.bf16.mxu1 %v398_v3 }
   0xb   :  { %371 = vmatpush3.bf16.msra.mxu0 %v398_v3  ;;  %393 = vmatpush3.bf16.msra.mxu1 %v398_v3 }
   0xe   :  { %373 = vmatmul.mubr.msk.bf16.vlgmr.msra.gmra.mxu0 %vm94_vm1, %v401_v6  ;;  %381 = vmatmul.mubr.msk.bf16.vlgmr.msra.gmra.mxu1 %vm94_vm1, %v402_v7 }
   0xf   :  { %376 = vmatprep.mubr.msk.bf16.mxu0 %vm94_vm1, %v403_v8  ;;  %384 = vmatprep.mubr.msk.bf16.mxu1 %vm94_vm1, %v404_v9 }
  0x16   :  { %377 = vmatmul.mubr.msk.bf16.gmra.mxu0 %vm94_vm1, %v405_v10  ;;  %385 = vmatmul.mubr.msk.bf16.gmra.mxu1 %vm94_vm1, %v406_v11 }
  0xce   :  { %v374_v13 = vpop.f32.mrf.mxu0  ;;  %v382_v15 = vpop.f32.mrf.mxu1 }
  0xcf   :  { %v229_v16 = vmul.f32 %v374_v13, %v476_v12  ;;  %v237_v17 = vmul.f32 %v382_v15, %v476_v12 }
  0xd0   :  { %v157_v18 = vpop.f32.mrf.mxu0  ;;  %v189_v19 = vpop.f32.mrf.mxu1 }
  0xd1   :  { %v252_v20 = vadd.f32 %v481_v14, %v229_v16  ;;  %v260_v21 = vadd.f32 %v481_v14, %v237_v17  ;;  %v227_v22 = vmul.f32 %v476_v12, %v157_v18  ;;  %v235_v23 = vmul.f32 %v476_v12, %v189_v19 }
  0xd2   :  { %v375_v24 = vpop.f32.mrf.mxu0  ;;  %v383_v25 = vpop.f32.mrf.mxu1 }
  0xd3   :  { %vm268_vm2 = vcmp.ge.f32.partialorder %v252_v20, 0.0  ;;  %v284_v26 = vmul.f32 0.01, %v252_v20  ;;  %vm276_vm3 = vcmp.ge.f32.partialorder %v260_v21, 0.0  ;;  %v292_v27 = vmul.f32 0.01, %v260_v21 }
  0xd4   :  { %v250_v28 = vadd.f32 %v481_v14, %v227_v22  ;;  %v258_v29 = vadd.f32 %v481_v14, %v235_v23  ;;  %v230_v30 = vmul.f32 %v375_v24, %v476_v12  ;;  %v238_v31 = vmul.f32 %v383_v25, %v476_v12  ;;  %v160_v32 = vpop.f32.mrf.mxu0  ;;  %v192_v33 = vpop.f32.mrf.mxu1 }
  0xd5   :  { %v300_v34 = vsel %vm268_vm2, %v252_v20, %v284_v26  ;;  %v308_v35 = vsel %vm276_vm3, %v260_v21, %v292_v27  ;;  %v228_v36 = vmul.f32 %v476_v12, %v160_v32  ;;  %v236_v37 = vmul.f32 %v476_v12, %v192_v33 }
  0xd6   :  { %316 = vst [vmem:[%s567_s4 + $0x10] sm:$0xff] %v300_v34  ;;  %324 = vst [vmem:[%s567_s4 + $0x50] sm:$0xff] %v308_v35  ;;  %vm266_vm4 = vcmp.ge.f32.partialorder %v250_v28, 0.0  ;;  %v282_v38 = vmul.f32 0.01, %v250_v28  ;;  %vm274_vm5 = vcmp.ge.f32.partialorder %v258_v29, 0.0  ;;  %v378_v40 = vpop.f32.mrf.mxu0  ;;  %v386_v41 = vpop.f32.mrf.mxu1  ;;  %v253_v42 = vadd.f32 %v481_v14, %v230_v30 }
  0xd7   :  { %v290_v39 = vmul.f32 0.01, %v258_v29  ;;  %v261_v43 = vadd.f32 %v481_v14, %v238_v31  ;;  %v251_v44 = vadd.f32 %v481_v14, %v228_v36  ;;  %v259_v45 = vadd.f32 %v481_v14, %v236_v37 }
  0xd8   :  { %v298_v46 = vsel %vm266_vm4, %v250_v28, %v282_v38  ;;  %v233_v48 = vmul.f32 %v378_v40, %v476_v12  ;;  %v241_v49 = vmul.f32 %v386_v41, %v476_v12  ;;  %v173_v50 = vpop.f32.mrf.mxu0  ;;  %v205_v51 = vpop.f32.mrf.mxu1  ;;  %vm269_vm6 = vcmp.ge.f32.partialorder %v253_v42, 0.0 }
  0xd9   :  { %v306_v47 = vsel %vm274_vm5, %v258_v29, %v290_v39  ;;  %314 = vst [vmem:[%s567_s4] sm:$0xff] %v298_v46  ;;  %v285_v52 = vmul.f32 0.01, %v253_v42  ;;  %vm277_vm7 = vcmp.ge.f32.partialorder %v261_v43, 0.0  ;;  %v293_v53 = vmul.f32 0.01, %v261_v43 }
  0xda   :  { %322 = vst [vmem:[%s567_s4 + $0x40] sm:$0xff] %v306_v47  ;;  %vm267_vm8 = vcmp.ge.f32.partialorder %v251_v44, 0.0  ;;  %v283_v54 = vmul.f32 0.01, %v251_v44  ;;  %vm275_vm9 = vcmp.ge.f32.partialorder %v259_v45, 0.0  ;;  %v379_v56 = vpop.f32.mrf.mxu0  ;;  %v387_v57 = vpop.f32.mrf.mxu1  ;;  %v256_v60 = vadd.f32 %v481_v14, %v233_v48 }
  0xdb   :  { %v291_v55 = vmul.f32 0.01, %v259_v45  ;;  %v301_v58 = vsel %vm269_vm6, %v253_v42, %v285_v52  ;;  %v309_v59 = vsel %vm277_vm7, %v261_v43, %v293_v53  ;;  %v264_v61 = vadd.f32 %v481_v14, %v241_v49 }
  0xdc   :  { %317 = vst [vmem:[%s567_s4 + $0x18] sm:$0xff] %v301_v58  ;;  %325 = vst [vmem:[%s567_s4 + $0x58] sm:$0xff] %v309_v59  ;;  %v299_v62 = vsel %vm267_vm8, %v251_v44, %v283_v54  ;;  %v231_v0 = vmul.f32 %v476_v12, %v173_v50  ;;  %v239_v1 = vmul.f32 %v476_v12, %v205_v51  ;;  %v176_v2 = vpop.f32.mrf.mxu0  ;;  %v208_v3 = vpop.f32.mrf.mxu1  ;;  %vm272_vm10 = vcmp.ge.f32.partialorder %v256_v60, 0.0 }
  0xdd   :  { %v307_v63 = vsel %vm275_vm9, %v259_v45, %v291_v55  ;;  %315 = vst [vmem:[%s567_s4 + $0x8] sm:$0xff] %v299_v62  ;;  %v288_v4 = vmul.f32 0.01, %v256_v60  ;;  %vm280_vm11 = vcmp.ge.f32.partialorder %v264_v61, 0.0  ;;  %v296_v5 = vmul.f32 0.01, %v264_v61 }
  0xde   :  { %323 = vst [vmem:[%s567_s4 + $0x48] sm:$0xff] %v307_v63  ;;  %v254_v6 = vadd.f32 %v481_v14, %v231_v0  ;;  %v262_v7 = vadd.f32 %v481_v14, %v239_v1  ;;  %v234_v8 = vmul.f32 %v379_v56, %v476_v12  ;;  %v242_v9 = vmul.f32 %v387_v57, %v476_v12 }
  0xdf   :  { %v304_v10 = vsel %vm272_vm10, %v256_v60, %v288_v4  ;;  %v312_v11 = vsel %vm280_vm11, %v264_v61, %v296_v5  ;;  %v232_v13 = vmul.f32 %v476_v12, %v176_v2  ;;  %v240_v15 = vmul.f32 %v476_v12, %v208_v3 }
  0xe0   :  { %320 = vst [vmem:[%s567_s4 + $0x30] sm:$0xff] %v304_v10  ;;  %328 = vst [vmem:[%s567_s4 + $0x70] sm:$0xff] %v312_v11  ;;  %vm270_vm12 = vcmp.ge.f32.partialorder %v254_v6, 0.0  ;;  %v286_v16 = vmul.f32 0.01, %v254_v6  ;;  %vm278_vm13 = vcmp.ge.f32.partialorder %v262_v7, 0.0  ;;  %v257_v18 = vadd.f32 %v481_v14, %v234_v8 }
  0xe1   :  { %v294_v17 = vmul.f32 0.01, %v262_v7  ;;  %v265_v19 = vadd.f32 %v481_v14, %v242_v9  ;;  %v255_v20 = vadd.f32 %v481_v14, %v232_v13  ;;  %v263_v12 = vadd.f32 %v481_v14, %v240_v15 }
  0xe2   :  { %v302_v21 = vsel %vm270_vm12, %v254_v6, %v286_v16  ;;  %vm273_vm14 = vcmp.ge.f32.partialorder %v257_v18, 0.0  ;;  %v289_v23 = vmul.f32 0.01, %v257_v18 }
  0xe3   :  { %v310_v22 = vsel %vm278_vm13, %v262_v7, %v294_v17  ;;  %318 = vst [vmem:[%s567_s4 + $0x20] sm:$0xff] %v302_v21  ;;  %vm281_vm15 = vcmp.ge.f32.partialorder %v265_v19, 0.0  ;;  %v297_v24 = vmul.f32 0.01, %v265_v19  ;;  %vm271_vm0 = vcmp.ge.f32.partialorder %v255_v20, 0.0 }
  0xe4   :  { %326 = vst [vmem:[%s567_s4 + $0x60] sm:$0xff] %v310_v22  ;;  %v287_v25 = vmul.f32 0.01, %v255_v20  ;;  %vm279_vm1 = vcmp.ge.f32.partialorder %v263_v12, 0.0  ;;  %v295_v26 = vmul.f32 0.01, %v263_v12  ;;  %v305_v27 = vsel %vm273_vm14, %v257_v18, %v289_v23 }
  0xe5   :  { %v313_v14 = vsel %vm281_vm15, %v265_v19, %v297_v24  ;;  %321 = vst [vmem:[%s567_s4 + $0x38] sm:$0xff] %v305_v27 }
  0xe6   :  { %329 = vst [vmem:[%s567_s4 + $0x78] sm:$0xff] %v313_v14  ;;  %v303_v28 = vsel %vm271_vm0, %v255_v20, %v287_v25  ;;  %v311_v29 = vsel %vm279_vm1, %v263_v12, %v295_v26 }
  0xe7   :  { %319 = vst [vmem:[%s567_s4 + $0x28] sm:$0xff] %v303_v28  ;;  %327 = vst [vmem:[%s567_s4 + $0x68] sm:$0xff] %v311_v29 }

// kernel: downsample_forward.2
= control target key start
LH: loop header
LB: loop body
LE: loop exit
PB: predicated region body
PF: predicated region fallthrough
CT: control target
= control target key end

     0   :  { %vm121_vm0 = vcmask 1041408   ;;  %vm96_vm1 = vcmask 293888   ;;  %v366_v12 = vmov 0.0   ;;  %s446_s1 = inlined_call_operand.vmem [shape: bf16[36,128], index: 1, kind: input, shape index: {}]   ;;  %s447_s0 = inlined_call_operand.vmem [shape: bf16[128,36], index: 0, kind: input, shape index: {}]   ;;  %s448_s2 = inlined_call_operand.vmem [shape: f32[1,128], index: 2, kind: output, shape index: {0}]   ;;  %s449_s3 = inlined_call_operand.vmem [shape: f32[1,128], index: 3, kind: output, shape index: {1}]  }
   0x1   :  { %v355_v0 = vld [vmem:[%s446_s1 + $0x10] ss:$0 sps:$4 sm:$0x33]   ;;  %v356_v1 = vld [vmem:[%s446_s1 + $0x8] sm:$0xff]   ;;  %v358_v3 = vld [vmem:[%s447_s0] sm:$0xff]   ;;  %18 = vst [vmem:[%s448_s2] sm:$0x1] %v366_v12 }
   0x2   :  { %352 = vmatprep.subr.msk.bf16.mxu0 %vm121_vm0, %v355_v0  ;;  %v123_v2 = vsel %vm121_vm0, %v355_v0, 0  ;;  %353 = vmatprep.subr.msk.bf16.mxu1 %vm121_vm0, %v355_v0  ;;  %v357_v4 = vld [vmem:[%s446_s1] sm:$0xff]   ;;  %v359_v6 = vld [vmem:[%s447_s0 + $0x8] sm:$0xff]   ;;  %v360_v8 = vld [vmem:[%s447_s0 + $0x10] sm:$0xff]   ;;  %19 = vst [vmem:[%s449_s3] sm:$0x1] %v366_v12 }
   0x3   :  { %325 = vmatpush3.bf16.msra.mxu0 %v123_v2  ;;  %349 = vmatpush3.bf16.msra.mxu1 %v123_v2  ;;  %v362_v5 = vld [vmem:[%s447_s0 + $0x20] sm:$0xff]   ;;  %v363_v7 = vld [vmem:[%s447_s0 + $0x28] sm:$0xff]   ;;  %v364_v9 = vld [vmem:[%s447_s0 + $0x30] sm:$0xff]  }
   0x4   :  { %326 = vmatprep.subr.bf16.mxu0 %v356_v1  ;;  %347 = vmatprep.subr.bf16.mxu1 %v356_v1  ;;  %v361_v10 = vld [vmem:[%s447_s0 + $0x18] sm:$0xff]  }
   0x5   :  { %330 = vmatprep.mubr.msk.bf16.mxu0 %vm96_vm1, %v358_v3  ;;  %338 = vmatprep.mubr.msk.bf16.mxu1 %vm96_vm1, %v362_v5  ;;  %v365_v11 = vld [vmem:[%s447_s0 + $0x38] sm:$0xff]  }
   0x7   :  { %327 = vmatpush3.bf16.msra.mxu0 %v356_v1  ;;  %350 = vmatpush3.bf16.msra.mxu1 %v356_v1 }
   0x8   :  { %328 = vmatprep.subr.bf16.mxu0 %v357_v4  ;;  %348 = vmatprep.subr.bf16.mxu1 %v357_v4 }
   0xb   :  { %329 = vmatpush3.bf16.msra.mxu0 %v357_v4  ;;  %351 = vmatpush3.bf16.msra.mxu1 %v357_v4 }
   0xe   :  { %331 = vmatmul.mubr.msk.bf16.vlgmr.msra.gmra.mxu0 %vm96_vm1, %v359_v6  ;;  %339 = vmatmul.mubr.msk.bf16.vlgmr.msra.gmra.mxu1 %vm96_vm1, %v363_v7 }
   0xf   :  { %334 = vmatprep.mubr.msk.bf16.mxu0 %vm96_vm1, %v360_v8  ;;  %342 = vmatprep.mubr.msk.bf16.mxu1 %vm96_vm1, %v364_v9 }
  0x16   :  { %335 = vmatmul.mubr.msk.bf16.gmra.mxu0 %vm96_vm1, %v361_v10  ;;  %343 = vmatmul.mubr.msk.bf16.gmra.mxu1 %vm96_vm1, %v365_v11 }
  0xce   :  { %v332_v13 = vpop.f32.mrf.mxu0  ;;  %v340_v14 = vpop.f32.mrf.mxu1 }
  0xcf   :  { %v249_v24 = vmul.f32 %v332_v13, %v332_v13  ;;  %v257_v55 = vmul.f32 %v340_v14, %v340_v14 }
  0xd0   :  { %v159_v15 = vpop.f32.mrf.mxu0  ;;  %v191_v17 = vpop.f32.mrf.mxu1 }
  0xd1   :  { %v247_v19 = vmul.f32 %v159_v15, %v159_v15  ;;  %v255_v48 = vmul.f32 %v191_v17, %v191_v17 }
  0xd2   :  { %v333_v16 = vpop.f32.mrf.mxu0  ;;  %v341_v23 = vpop.f32.mrf.mxu1 }
  0xd3   :  { %v250_v28 = vmul.f32 %v333_v16, %v333_v16  ;;  %v258_v58 = vmul.f32 %v341_v23, %v341_v23 }
  0xd4   :  { %v162_v18 = vpop.f32.mrf.mxu0  ;;  %v194_v32 = vpop.f32.mrf.mxu1 }
  0xd5   :  { %v223_v20 = vadd.f32 %v162_v18, %v159_v15  ;;  %v248_v21 = vmul.f32 %v162_v18, %v162_v18  ;;  %v256_v52 = vmul.f32 %v194_v32, %v194_v32 }
  0xd6   :  { %v336_v22 = vpop.f32.mrf.mxu0  ;;  %v344_v40 = vpop.f32.mrf.mxu1 }
  0xd7   :  { %v224_v25 = vadd.f32 %v332_v13, %v223_v20  ;;  %v263_v26 = vadd.f32 %v248_v21, %v247_v19  ;;  %v253_v41 = vmul.f32 %v336_v22, %v336_v22  ;;  %v261_v4 = vmul.f32 %v344_v40, %v344_v40  ;;  %v222_v20 = vld [vmem:[%s448_s2] sm:$0x1] }
  0xd8   :  { %v175_v27 = vpop.f32.mrf.mxu0  ;;  %v207_v47 = vpop.f32.mrf.mxu1 }
  0xd9   :  { %v264_v29 = vadd.f32 %v263_v26, %v249_v24  ;;  %v225_v30 = vadd.f32 %v333_v16, %v224_v25  ;;  %v251_v34 = vmul.f32 %v175_v27, %v175_v27  ;;  %v259_v63 = vmul.f32 %v207_v47, %v207_v47 }
  0xda   :  { %v337_v31 = vpop.f32.mrf.mxu0  ;;  %v345_v54 = vpop.f32.mrf.mxu1 }
  0xdb   :  { %v226_v33 = vadd.f32 %v225_v30, %v175_v27  ;;  %v265_v35 = vadd.f32 %v264_v29, %v250_v28  ;;  %v254_v44 = vmul.f32 %v337_v31, %v337_v31  ;;  %v262_v7 = vmul.f32 %v345_v54, %v345_v54 }
  0xdc   :  { %v178_v36 = vpop.f32.mrf.mxu0  ;;  %v210_v61 = vpop.f32.mrf.mxu1 }
  0xdd   :  { %v266_v37 = vadd.f32 %v265_v35, %v251_v34  ;;  %v227_v38 = vadd.f32 %v226_v33, %v178_v36  ;;  %v252_v39 = vmul.f32 %v178_v36, %v178_v36  ;;  %v260_v3 = vmul.f32 %v210_v61, %v210_v61 }
  0xdf   :  { %v228_v42 = vadd.f32 %v336_v22, %v227_v38  ;;  %v267_v43 = vadd.f32 %v266_v37, %v252_v39 }
  0xe1   :  { %v229_v45 = vadd.f32 %v337_v31, %v228_v42  ;;  %v268_v46 = vadd.f32 %v267_v43, %v253_v41 }
  0xe3   :  { %v269_v49 = vadd.f32 %v268_v46, %v254_v44  ;;  %v230_v50 = vadd.f32 %v229_v45, %v191_v17 }
  0xe5   :  { %v231_v51 = vadd.f32 %v230_v50, %v194_v32  ;;  %v270_v53 = vadd.f32 %v269_v49, %v255_v48 }
  0xe7   :  { %v232_v56 = vadd.f32 %v340_v14, %v231_v51  ;;  %v271_v57 = vadd.f32 %v270_v53, %v256_v52 }
  0xe9   :  { %v272_v59 = vadd.f32 %v271_v57, %v257_v55  ;;  %v233_v60 = vadd.f32 %v341_v23, %v232_v56  ;;  %v246_v23 = vld [vmem:[%s449_s3] sm:$0x1] }
  0xeb   :  { %v234_v62 = vadd.f32 %v233_v60, %v207_v47  ;;  %v273_v0 = vadd.f32 %v272_v59, %v258_v58 }
  0xed   :  { %v274_v1 = vadd.f32 %v273_v0, %v259_v63  ;;  %v235_v2 = vadd.f32 %v234_v62, %v210_v61 }
  0xef   :  { %v236_v5 = vadd.f32 %v344_v40, %v235_v2  ;;  %v275_v6 = vadd.f32 %v274_v1, %v260_v3 }
  0xf1   :  { %v237_v8 = vadd.f32 %v345_v54, %v236_v5  ;;  %v276_v9 = vadd.f32 %v275_v6, %v261_v4 }
  0xf3   :  { %v238_v10 = vrot.slane %v237_v8, 4  ;;  %v277_v11 = vadd.f32 %v276_v9, %v262_v7 }
  0xf5   :  { %v239_v12 = vadd.f32 %v238_v10, %v237_v8  ;;  %v278_v13 = vrot.slane %v277_v11, 4 }
  0xf7   :  { %v240_v14 = vrot.slane %v239_v12, 2  ;;  %v279_v15 = vadd.f32 %v278_v13, %v277_v11 }
  0xf9   :  { %v241_v16 = vadd.f32 %v240_v14, %v239_v12  ;;  %v280_v17 = vrot.slane %v279_v15, 2 }
  0xfb   :  { %v242_v18 = vrot.slane %v241_v16, 1  ;;  %v281_v19 = vadd.f32 %v280_v17, %v279_v15 }
  0xfd   :  { %v243_v21 = vadd.f32 %v242_v18, %v241_v16  ;;  %v282_v22 = vrot.slane %v281_v19, 1 }
  0xff   :  { %v244_v24 = vadd.f32 %v243_v21, %v222_v20  ;;  %v283_v25 = vadd.f32 %v282_v22, %v281_v19 }
 0x101   :  { %245 = vst [vmem:[%s448_s2] sm:$0x1] %v244_v24  ;;  %v284_v26 = vadd.f32 %v283_v25, %v246_v23 }
 0x103   :  { %285 = vst [vmem:[%s449_s3] sm:$0x1] %v284_v26 }

</bundles_post_ra>
